<compile_context>
chip_gen: v7x
topology: tpu7x:2x2x1
jax: 0.10.0
libtpu: 0.0.40
codegen_flags: <defaults>
</compile_context>

<pallas_src>
import jax
import jax.numpy as jnp
from jax import lax
from jax.experimental import pallas as pl
from jax.experimental.pallas import tpu as pltpu


# 'mk,nk->mn': contract the last dims of both operands (x is (M,K), w is (N,K)).
_DOT_DIMS = (((1,), (1,)), ((), ()))


def _single_block_kernel(x_ref, w_ref, o_ref):
    # Whole problem in one VMEM block: one MXU dot, store once.
    o_ref[...] = lax.dot_general(
        x_ref[...], w_ref[...],
        dimension_numbers=_DOT_DIMS,
        preferred_element_type=jnp.float32,
    ).astype(o_ref.dtype)


def _tiled_kernel_f32(x_ref, w_ref, o_ref):
    # Output block is VMEM-resident across the K grid axis (its index_map
    # ignores k), so accumulate straight into it: no scratch, no final copy.
    @pl.when(pl.program_id(2) == 0)
    def _init():
        o_ref[...] = jnp.zeros_like(o_ref)

    o_ref[...] += lax.dot_general(
        x_ref[...], w_ref[...],
        dimension_numbers=_DOT_DIMS,
        preferred_element_type=jnp.float32,
    )


def _tiled_kernel_cast(x_ref, w_ref, o_ref, acc_ref):
    # Narrow output dtype: keep an f32 accumulator, cast on the last K step.
    @pl.when(pl.program_id(2) == 0)
    def _init():
        acc_ref[...] = jnp.zeros_like(acc_ref)

    acc_ref[...] += lax.dot_general(
        x_ref[...], w_ref[...],
        dimension_numbers=_DOT_DIMS,
        preferred_element_type=jnp.float32,
    )

    @pl.when(pl.program_id(2) == pl.num_programs(2) - 1)
    def _finalize():
        o_ref[...] = acc_ref[...].astype(o_ref.dtype)


def _pad_to(a, target_shape):
    pads = [(0, t - s) for s, t in zip(a.shape, target_shape)]
    if any(hi for _, hi in pads):
        return jnp.pad(a, pads)
    return a


def _pick_tile_128(dim, max_tile):
    """Lane-aligned tile choice: round `dim` up to 128; if that fits under
    `max_tile`, use one full-extent block, otherwise the largest 128-multiple
    tile that divides the rounded-up size (no padding beyond 128-alignment)."""
    padded = 128 * pl.cdiv(dim, 128)
    if padded <= max_tile:
        return padded, padded
    for t in (512, 384, 256, 128):
        if t <= max_tile and padded % t == 0:
            return t, padded
    return 128, padded


def linear_regression_forward(x, weight, *, max_tile=512, force_tiled=False):
    """out = x @ weight.T  (bias-free nn.Linear, PyTorch weight layout).

    x:      (B, D_in)
    weight: (D_out, D_in)
    returns (B, D_out) in x.dtype
    """
    B, D_in = x.shape
    D_out, D_in_w = weight.shape
    assert D_in == D_in_w, (x.shape, weight.shape)

    itemsize = jnp.dtype(x.dtype).itemsize
    out_shape = jax.ShapeDtypeStruct((B, D_out), x.dtype)

    # ---------- Fast path: everything fits one VMEM block -------------------
    # No padding, no grid; full-array blocks satisfy the (8,128)-or-full-dim
    # layout rule. Removes all pad/transpose/slice overhead for small shapes.
    total_bytes = (B * D_in + D_out * D_in + B * D_out) * itemsize
    if (not force_tiled and total_bytes <= 6 * 1024 * 1024
            and max(B, D_in, D_out) <= 2048):
        cost = pl.CostEstimate(
            flops=2 * B * D_in * D_out,
            transcendentals=0,
            bytes_accessed=total_bytes,
        )
        return pl.pallas_call(
            _single_block_kernel,
            out_shape=out_shape,
            in_specs=[
                pl.BlockSpec(memory_space=pltpu.MemorySpace.VMEM),
                pl.BlockSpec(memory_space=pltpu.MemorySpace.VMEM),
            ],
            out_specs=pl.BlockSpec(memory_space=pltpu.MemorySpace.VMEM),
            cost_estimate=cost,
        )(x, weight)

    # ---------- Tiled path ---------------------------------------------------
    # M axis: whole (padded) batch in one block when it is small, so the
    # weight streams from HBM exactly once; otherwise 512-row tiles.
    Mp0 = 8 * pl.cdiv(B, 8)
    if Mp0 <= 2 * max_tile:
        tm, Mp = Mp0, Mp0
    else:
        tm = max_tile
        Mp = tm * pl.cdiv(B, tm)

    tn, Np = _pick_tile_128(D_out, max_tile)
    tk, Kp = _pick_tile_128(D_in, max_tile)

    xp = _pad_to(x, (Mp, Kp))        # zero padding is inert for the dot
    wp = _pad_to(weight, (Np, Kp))   # native (D_out, D_in) layout, no .T copy

    grid = (Mp // tm, Np // tn, Kp // tk)

    # Real streaming traffic: x re-read once per N block, weight once per M block.
    cost = pl.CostEstimate(
        flops=2 * Mp * Np * Kp,
        transcendentals=0,
        bytes_accessed=((Mp * Kp) * (Np // tn)
                        + (Np * Kp) * (Mp // tm)
                        + Mp * Np) * itemsize,
    )

    if jnp.dtype(x.dtype) == jnp.float32:
        kernel = _tiled_kernel_f32
        scratch_shapes = []
    else:
        kernel = _tiled_kernel_cast
        scratch_shapes = [pltpu.VMEM((tm, tn), jnp.float32)]

    out_p = pl.pallas_call(
        kernel,
        out_shape=jax.ShapeDtypeStruct((Mp, Np), x.dtype),
        grid=grid,
        in_specs=[
            pl.BlockSpec((tm, tk), lambda i, j, k: (i, k)),   # x tile  (M, K)
            pl.BlockSpec((tn, tk), lambda i, j, k: (j, k)),   # W tile  (N, K)
        ],
        out_specs=pl.BlockSpec((tm, tn), lambda i, j, k: (i, j)),
        scratch_shapes=scratch_shapes,
        compiler_params=pltpu.CompilerParams(
            dimension_semantics=("parallel", "parallel", "arbitrary"),
            vmem_limit_bytes=48 * 1024 * 1024,
        ),
        cost_estimate=cost,
    )(xp, wp)

    if (Mp, Np) != (B, D_out):
        out_p = out_p[:B, :D_out]
    return out_p


if __name__ == "__main__":
    key = jax.random.PRNGKey(0)
    kx, kw, kx2, kw2 = jax.random.split(key, 4)

    # --- Module demo shape: small batch, tiny feature dims (fast path) ------
    batch, input_size, output_size = 8, 32, 16
    x = jax.random.normal(kx, (batch, input_size), dtype=jnp.float32)
    # Deterministic "weights" argument of the module: (outputSize, inputSize).
    weight = jax.random.normal(kw, (output_size, input_size), dtype=jnp.float32)

    out = jax.block_until_ready(linear_regression_forward(x, weight))
    ref = x @ weight.T
    assert out.shape == (batch, output_size)
    assert jnp.allclose(out, ref, atol=1e-5, rtol=1e-5)

    # --- Also exercise the tiled (large-shape) path once ---------------------
    B2, K2, N2 = 256, 1024, 512
    x2 = jax.random.normal(kx2, (B2, K2), dtype=jnp.float32)
    w2 = jax.random.normal(kw2, (N2, K2), dtype=jnp.float32)
    out2 = jax.block_until_ready(
        linear_regression_forward(x2, w2, force_tiled=True))
    ref2 = jnp.dot(x2, w2.T, precision=jax.lax.Precision.HIGHEST)
    assert out2.shape == (B2, N2)
    assert jnp.allclose(out2, ref2, atol=2e-3, rtol=2e-3)

    print("KERNEL_OK")
</pallas_src>

<mosaic_0001>
module attributes {stable_mosaic.version = 11 : i64} {
  func.func @_single_block_kernel(%arg0: memref<8x32xf32, #tpu.memory_space<vmem>>, %arg1: memref<16x32xf32, #tpu.memory_space<vmem>>, %arg2: memref<8x16xf32, #tpu.memory_space<vmem>>) attributes {dimension_semantics = [], scalar_prefetch = 0 : i64, scratch_operands = 0 : i64, tpu.core_type = #tpu.core_type<tc>} {
    %c0 = arith.constant 0 : index
    %c0_0 = arith.constant 0 : index
    %0 = vector.load %arg0[%c0, %c0_0] : memref<8x32xf32, #tpu.memory_space<vmem>>, vector<8x32xf32>
    %c0_1 = arith.constant 0 : index
    %c0_2 = arith.constant 0 : index
    %1 = vector.load %arg1[%c0_1, %c0_2] : memref<16x32xf32, #tpu.memory_space<vmem>>, vector<16x32xf32>
    %cst = arith.constant dense<0.000000e+00> : vector<8x16xf32>
    %2 = tpu.matmul %0, %1, %cst {dimension_numbers = #tpu.dot_dimension_numbers<[1], [1], [0], [0], [0, 0, 1, 0], [], []>} : vector<8x32xf32>, vector<16x32xf32>, vector<8x16xf32> -> vector<8x16xf32>
    %c0_3 = arith.constant 0 : index
    %c0_4 = arith.constant 0 : index
    %3 = vector.load %arg2[%c0_3, %c0_4] : memref<8x16xf32, #tpu.memory_space<vmem>>, vector<8x16xf32>
    tpu.vector_store %arg2[%c0_3, %c0_4], %2 {strides = array<i32>} : memref<8x16xf32, #tpu.memory_space<vmem>>, vector<8x16xf32>,
    return
  }
}

</mosaic_0001>

<bundles_post_ra>
// kernel: tpu_custom_call.1
= control target key start
LH: loop header
LB: loop body
LE: loop exit
PB: predicated region body
PF: predicated region fallthrough
CT: control target
= control target key end

     0   :  { %7 = vsyncpa [#allocation3], 0  ;;  %s302_s0 = inlined_call_operand.hbm [shape: f32[8,32], index: 0, kind: input, shape index: {}]   ;;  %s303_s1 = inlined_call_operand.hbm [shape: f32[16,32], index: 1, kind: input, shape index: {}]   ;;  %s304_s2 = inlined_call_operand.hbm [shape: f32[8,16], index: 2, kind: output, shape index: {}]  }
   0x1   :  { %8 = vsyncpa [#allocation6], 0 }
   0x2   :  { %9 = vsyncpa [#allocation4], 0  ;;  %s236_s9 = smov [#allocation2]   ;;  %s237_s11 = smov [#allocation5]  }
   0x3   :  { %s16_s10 = sshll.u32 %s236_s9, 4  ;;  %s25_s12 = sshll.u32 %s237_s11, 4  ;;  %s17_s10 = int_to_ptr.vmem [resolvable:$true] %s16_s10  ;;  %s259_s12 = int_to_ptr.vmem [resolvable:$true] %s25_s12 }
   0x4   :  { %s164_s15 = scalar_lea.hbm %s302_s0, 128 }
   0x5   :  { %p165_p0 = scmp.ne.s32.totalorder %s302_s0, %s164_s15  ;;  %p168_p1 = scmp.lt.u32.totalorder %s164_s15, %s302_s0 }
   0x7   :  { %p170_p2 = pnand %p168_p1, %p165_p0 }
   0x9   :  { %173 = shalt.err (!%p170_p2)
}
   0xa   :  { %s174_s20 = scalar_lea.vmem %s17_s10, 128  ;;  %p179_p4 = scmp.lt.s32.totalorder %s17_s10, %s17_s10 }
   0xb   :  { %p175_p3 = scmp.ne.s32.totalorder %s17_s10, %s174_s20  ;;  %p180_p5 = scmp.lt.s32.totalorder %s174_s20, %s174_s20 }
   0xd   :  { %p181_p6 = por %p180_p5, %p179_p4 }
   0xf   :  { %p182_p7 = pnand %p181_p6, %p175_p3 }
  0x11   :  { %185 = shalt.err (!%p182_p7)
}
  0x12   :  { %19 = dma.hbm_to_vmem [thread:$0]  %s302_s0, 128, %s17_s10, [#allocation3]  }
  0x13   :  { %s186_s25 = scalar_lea.hbm %s303_s1, 256 }
  0x14   :  { %p187_p8 = scmp.ne.s32.totalorder %s303_s1, %s186_s25  ;;  %p190_p9 = scmp.lt.u32.totalorder %s186_s25, %s303_s1 }
  0x16   :  { %p192_p10 = pnand %p190_p9, %p187_p8 }
  0x18   :  { %195 = shalt.err (!%p192_p10)
}
  0x19   :  { %s196_s30 = scalar_lea.vmem %s259_s12, 256  ;;  %p201_p12 = scmp.lt.s32.totalorder %s259_s12, %s259_s12 }
  0x1a   :  { %p197_p11 = scmp.ne.s32.totalorder %s259_s12, %s196_s30  ;;  %p202_p13 = scmp.lt.s32.totalorder %s196_s30, %s196_s30 }
  0x1c   :  { %p203_p0 = por %p202_p13, %p201_p12 }
  0x1e   :  { %p204_p1 = pnand %p203_p0, %p197_p11 }
  0x20   :  { %207 = shalt.err (!%p204_p1)
}
  0x21   :  { %s238_s0 = smov 128   ;;  %s239_s3 = smov 8  }
  0x22   :  { %31 = dma.hbm_to_vmem [thread:$0]  %s303_s1, 256, %s259_s12, [#allocation6], %s238_s0, %s238_s0, %s239_s3  }
  0x23   :  { %230 = dma.done.wait [#allocation3], 128  }
  0x24   :  { %231 = vsyncadd [#allocation3], 4294967168 }
  0x25   :  { %232 = dma.done.wait [#allocation6], 256  }
  0x26   :  { %233 = vsyncadd [#allocation6], 4294967040  ;;  %v240_v0 = vmov 0.0|0.0   ;;  %vm241_vm0 = vmmov 0   ;;  %v242_v1 = vmov 0.0   ;;  %vm41_vm1 = vcmask 261120  }
  0x27   :  { %152 = vmatprep.subr.bf16.mxu0 %v240_v0  ;;  %149 = vmatprep.mubr.msk.f32.mxu0 %vm241_vm0, %v242_v1  ;;  %v39_v2 = vld [vmem:[#allocation5] sm:$0xff]  ;;  %v40_v3 = vld [vmem:[#allocation5 + $0x8] sm:$0xff]  ;;  %vm154_vm2 = vmpackc.low %vm41_vm1, %vm41_vm1  ;;  %s243_s6 = smov [#allocation7]   ;;  %vm121_vm3 = vcmask 130048  }
  0x28   :  { %v153_v4 = vpack.c.bf16 %v40_v3, %v39_v2  ;;  %v38_v5 = vld [vmem:[#allocation2] sm:$0xff]  ;;  %s129_s7 = sshll.u32 %s243_s6, 4  ;;  %s130_s7 = int_to_ptr.vmem [resolvable:$true] %s129_s7 }
  0x29   :  { %s208_s1 = scalar_lea.vmem %s130_s7, 128  ;;  %p213_p3 = scmp.lt.s32.totalorder %s130_s7, %s130_s7 }
  0x2a   :  { %155 = vmatpush3.bf16.xpose.msk.msra.mxu0 %vm154_vm2, %v153_v4  ;;  %p209_p2 = scmp.ne.s32.totalorder %s130_s7, %s208_s1  ;;  %p214_p4 = scmp.lt.s32.totalorder %s208_s1, %s208_s1 }
  0x2c   :  { %p215_p5 = por %p214_p4, %p213_p3 }
  0x2e   :  { %p216_p6 = pnand %p215_p5, %p209_p2 }
  0x31   :  { %150 = vmatmul.mubr.msk.f32.vlgmr.msra.gmra.mrb[0].mxu0 %vm41_vm1, %v38_v5 }
 0x104   :  { %v117_v6 = vpop.f32.mrb[0].mxu0 }
 0x105   :  { %v151_v7 = vpop.f32.mrb[1].mxu0  ;;  %122 = vst.msk [vmem:[#allocation7] sm:$0xff] %vm121_vm3, %v117_v6 }
 0x106   :  { %219 = shalt.err (!%p216_p6)
}
 0x107   :  { %s220_s10 = scalar_lea.hbm %s304_s2, 128 }
 0x108   :  { %p221_p7 = scmp.ne.s32.totalorder %s304_s2, %s220_s10  ;;  %p224_p8 = scmp.lt.u32.totalorder %s220_s10, %s304_s2 }
 0x10a   :  { %p226_p9 = pnand %p224_p8, %p221_p7 }
 0x10c   :  { %229 = shalt.err (!%p226_p9)
}
 0x10d   :  { %132 = dma.vmem_to_hbm [thread:$0]  %s130_s7, 128, %s304_s2, [#allocation4]  }
 0x10e   :  { %234 = dma.done.wait [#allocation4], 128  }
 0x10f   :  { %235 = vsyncadd [#allocation4], 4294967168 }
 0x110   :  { %136 = vsyncpa [#allocation3], 1 }
 0x111   :  { %137 = vsyncpa [#allocation6], 1 }
 0x112   :  { %138 = vsyncpa [#allocation4], 1 }

</bundles_post_ra>
